<compile_context>
chip_gen: v6e
topology: v6e:2x2x1
jax: 0.10.0
libtpu: 0.0.40
codegen_flags: <defaults>
</compile_context>

<pallas_src>
import functools
import math

import jax
import jax.numpy as jnp
from jax import lax
from jax.experimental import pallas as pl
from jax.experimental.pallas import tpu as pltpu


def _round_up(a: int, b: int) -> int:
    return (a + b - 1) // b * b


_GELU_C = float(math.sqrt(2.0 / math.pi))
_GELU_A = 0.44715          # NOTE: the reference GELU uses 0.44715, not 0.044715.
_LN_EPS = 1e-5


# ---------------------------------------------------------------------------
# In-kernel helpers (f32 math)
# ---------------------------------------------------------------------------
def _ln_f32(x, scale):
    """LayerNorm exactly as the reference: biased variance, and it returns
    scale * x_norm + scale (it adds `scale`, not `shift`)."""
    mean = jnp.mean(x, axis=-1, keepdims=True)
    var = jnp.mean(jnp.square(x - mean), axis=-1, keepdims=True)
    x_norm = (x - mean) * lax.rsqrt(var + jnp.float32(_LN_EPS))
    return scale * x_norm + scale


def _gelu_f32(h):
    """0.5*h*(1 + tanh(sqrt(2/pi)*(h + 0.44715*h^3))), factored as
    h * (c + 0.44715*c*h*h) to save one VPU multiply; tanh -> EUP slot."""
    c = jnp.float32(_GELU_C)
    ac = jnp.float32(_GELU_A * _GELU_C)
    return jnp.float32(0.5) * h * (jnp.float32(1.0) + jnp.tanh(h * (c + ac * (h * h))))


# ---------------------------------------------------------------------------
# Standalone LayerNorm kernel (LayerNorm class)
# ---------------------------------------------------------------------------
def _layernorm_kernel(x_ref, scale_ref, o_ref):
    x = x_ref[...].astype(jnp.float32)
    s = scale_ref[...].astype(jnp.float32)
    o_ref[...] = _ln_f32(x, s).astype(o_ref.dtype)


@functools.partial(jax.jit, static_argnames=("tm",))
def layer_norm(x, scale, *, tm=256):
    B, T, D = x.shape
    M = B * T
    tm = max(8, (int(tm) // 8) * 8)
    tm_eff = min(tm, _round_up(M, 8))
    M_pad = _round_up(M, tm_eff)
    x2d = x.reshape(M, D)
    if M_pad != M:
        x2d = jnp.pad(x2d, ((0, M_pad - M), (0, 0)))
    out2d = pl.pallas_call(
        _layernorm_kernel,
        out_shape=jax.ShapeDtypeStruct((M_pad, D), x.dtype),
        grid_spec=pltpu.PrefetchScalarGridSpec(
            num_scalar_prefetch=0,
            grid=(M_pad // tm_eff,),
            in_specs=[
                pl.BlockSpec((tm_eff, D), lambda i: (i, 0)),
                pl.BlockSpec((1, D), lambda i: (0, 0)),
            ],
            out_specs=pl.BlockSpec((tm_eff, D), lambda i: (i, 0)),
        ),
        compiler_params=pltpu.CompilerParams(dimension_semantics=("parallel",)),
    )(x2d, scale.reshape(1, D))
    return out2d[:M].reshape(B, T, D)


# ---------------------------------------------------------------------------
# Fused FeedForward kernel: Linear -> tanh-GELU -> Linear (FeedForward class)
# ---------------------------------------------------------------------------
def _ffn_kernel(x_ref, w1_ref, b1_ref, w2_ref, b2_ref, o_ref):
    # (tm, d_in) @ (d_in, d_hidden) on the MXU, f32 accumulation + f32 bias.
    h = jnp.dot(x_ref[...], w1_ref[...],
                preferred_element_type=jnp.float32) + b1_ref[...]
    g = _gelu_f32(h)
    # Second matmul back in the compute dtype (bf16 by default), f32 accumulate.
    y = jnp.dot(g.astype(w2_ref.dtype), w2_ref[...],
                preferred_element_type=jnp.float32) + b2_ref[...]
    o_ref[...] = y.astype(o_ref.dtype)


@functools.partial(jax.jit, static_argnames=("tm", "compute_dtype"))
def feed_forward(x, w1, b1, w2, b2, *, tm=256, compute_dtype=jnp.bfloat16):
    """x: (B, T, d_in); w1: (d_in, d_hidden); b1: (d_hidden,);
    w2: (d_hidden, d_in); b2: (d_in,).  Returns (B, T, d_in) in x.dtype."""
    B, T, d_in = x.shape
    d_hidden = w1.shape[1]
    M = B * T
    out_dtype = x.dtype

    # Row tiling: clamp to the problem, keep 8-aligned, pad rows if needed.
    tm = max(8, (int(tm) // 8) * 8)
    tm_eff = min(tm, _round_up(M, 8))
    M_pad = _round_up(M, tm_eff)

    x2d = x.reshape(M, d_in)
    if M_pad != M:
        x2d = jnp.pad(x2d, ((0, M_pad - M), (0, 0)))
    x2d = x2d.astype(compute_dtype)
    w1c = w1.astype(compute_dtype)
    w2c = w2.astype(compute_dtype)
    b1_2d = b1.reshape(1, d_hidden).astype(jnp.float32)
    b2_2d = b2.reshape(1, d_in).astype(jnp.float32)

    c_item = jnp.dtype(compute_dtype).itemsize
    o_item = jnp.dtype(out_dtype).itemsize

    # Per-generation VMEM budget (weights are double-buffered by the pipeline).
    weight_bytes = 2 * d_in * d_hidden * c_item + (d_in + d_hidden) * 4
    need = (2 * weight_bytes
            + 2 * tm_eff * d_in * (c_item + o_item)   # double-buffered x / out tiles
            + 6 * tm_eff * d_hidden * 4)               # f32 hidden / GELU temporaries
    try:
        vmem_cap = int(pltpu.get_tpu_info().vmem_capacity_bytes)
    except Exception:
        vmem_cap = 64 << 20                            # conservative (v7x-sized)
    vmem_limit = int(min(max(need + (8 << 20), 32 << 20), (vmem_cap * 3) // 4))

    cost = pl.CostEstimate(
        flops=4 * M_pad * d_in * d_hidden,             # two matmuls
        transcendentals=M_pad * d_hidden,              # one tanh per hidden element
        bytes_accessed=int(M_pad * d_in * (c_item + o_item) + weight_bytes),
    )

    out2d = pl.pallas_call(
        _ffn_kernel,
        out_shape=jax.ShapeDtypeStruct((M_pad, d_in), out_dtype),
        grid_spec=pltpu.PrefetchScalarGridSpec(
            num_scalar_prefetch=0,
            grid=(M_pad // tm_eff,),
            in_specs=[
                pl.BlockSpec((tm_eff, d_in), lambda i: (i, 0)),       # x rows
                pl.BlockSpec((d_in, d_hidden), lambda i: (0, 0)),     # W1 (grid-invariant)
                pl.BlockSpec((1, d_hidden), lambda i: (0, 0)),        # b1
                pl.BlockSpec((d_hidden, d_in), lambda i: (0, 0)),     # W2
                pl.BlockSpec((1, d_in), lambda i: (0, 0)),            # b2
            ],
            out_specs=pl.BlockSpec((tm_eff, d_in), lambda i: (i, 0)),
        ),
        compiler_params=pltpu.CompilerParams(
            dimension_semantics=("parallel",),   # shard rows across TCs on v7x
            vmem_limit_bytes=vmem_limit,
        ),
        cost_estimate=cost,
    )(x2d, w1c, b1_2d, w2c, b2_2d)

    return out2d[:M].reshape(B, T, d_in)


# ---------------------------------------------------------------------------
# Fused sub-block kernel: out = x + MHSA(LayerNorm(x))  (one pallas_call,
# one HBM round-trip for x per sub-block; grid over batch).
# ---------------------------------------------------------------------------
def _ln_attn_res_kernel(x_ref, s_ref, wq_ref, wk_ref, wv_ref, wo_ref, bo_ref, o_ref):
    x = x_ref[0].astype(jnp.float32)                       # (T, D) residual input
    h = _ln_f32(x, s_ref[...].astype(jnp.float32))         # pre-LN

    n_heads, _, head_dim = wq_ref.shape
    T = x.shape[0]
    inv_sqrt_d = jnp.float32(1.0 / math.sqrt(head_dim))

    row = lax.broadcasted_iota(jnp.int32, (T, T), 0)
    col = lax.broadcasted_iota(jnp.int32, (T, T), 1)
    causal = col <= row                                    # allowed positions

    acc = jnp.zeros((T, wo_ref.shape[2]), jnp.float32)
    for hd in range(n_heads):                              # static unroll over heads
        q = jnp.dot(h, wq_ref[hd].astype(jnp.float32), preferred_element_type=jnp.float32)
        k = jnp.dot(h, wk_ref[hd].astype(jnp.float32), preferred_element_type=jnp.float32)
        v = jnp.dot(h, wv_ref[hd].astype(jnp.float32), preferred_element_type=jnp.float32)
        s = lax.dot_general(q, k, (((1,), (1,)), ((), ())),
                            preferred_element_type=jnp.float32) * inv_sqrt_d
        s = jnp.where(causal, s, -jnp.inf)                 # masked_fill(-inf) as in reference
        m = jnp.max(s, axis=-1, keepdims=True)
        e = jnp.exp(s - m)
        p = e / jnp.sum(e, axis=-1, keepdims=True)
        ctx = jnp.dot(p, v, preferred_element_type=jnp.float32)
        # concat-over-heads followed by out_proj  ==  sum_h ctx_h @ Wo_h
        acc = acc + jnp.dot(ctx, wo_ref[hd].astype(jnp.float32),
                            preferred_element_type=jnp.float32)

    out = x + acc + bo_ref[...].astype(jnp.float32)        # residual + out_proj bias
    o_ref[0] = out.astype(o_ref.dtype)


@functools.partial(jax.jit, static_argnames=("n_heads",))
def ln_mhsa_residual(x, ln_scale, wq, wk, wv, wo, bo, *, n_heads):
    """Fused pre-LN causal MHSA sub-block: x + attn(norm(x)).
    Weights stored transposed from nn.Linear (y = x @ W + b); qkv_bias=False,
    bias only on the output projection.
    TODO(synk): nn.Dropout on the attention weights / residual branch is
    modeled as inference-mode identity (no RNG)."""
    B, T, D = x.shape
    assert D % n_heads == 0
    Dh = D // n_heads
    # Pre-split projection weights per head so the kernel only ever indexes the
    # leading axis (cheap) instead of slicing along lanes.
    wq_h = wq.reshape(D, n_heads, Dh).transpose(1, 0, 2)   # (H, d_in, Dh)
    wk_h = wk.reshape(D, n_heads, Dh).transpose(1, 0, 2)
    wv_h = wv.reshape(D, n_heads, Dh).transpose(1, 0, 2)
    wo_h = wo.reshape(n_heads, Dh, D)                      # (H, Dh, d_out)

    return pl.pallas_call(
        _ln_attn_res_kernel,
        out_shape=jax.ShapeDtypeStruct((B, T, D), x.dtype),
        grid_spec=pltpu.PrefetchScalarGridSpec(
            num_scalar_prefetch=0,
            grid=(B,),
            in_specs=[
                pl.BlockSpec((1, T, D), lambda b: (b, 0, 0)),          # x (per batch)
                pl.BlockSpec((1, D), lambda b: (0, 0)),                # LN scale
                pl.BlockSpec((n_heads, D, Dh), lambda b: (0, 0, 0)),   # Wq
                pl.BlockSpec((n_heads, D, Dh), lambda b: (0, 0, 0)),   # Wk
                pl.BlockSpec((n_heads, D, Dh), lambda b: (0, 0, 0)),   # Wv
                pl.BlockSpec((n_heads, Dh, D), lambda b: (0, 0, 0)),   # Wo
                pl.BlockSpec((1, D), lambda b: (0, 0)),                # bo
            ],
            out_specs=pl.BlockSpec((1, T, D), lambda b: (b, 0, 0)),
        ),
        compiler_params=pltpu.CompilerParams(dimension_semantics=("parallel",)),
    )(x, ln_scale.reshape(1, D), wq_h, wk_h, wv_h, wo_h, bo.reshape(1, D))


# ---------------------------------------------------------------------------
# Full TransformerLayer forward.
# ---------------------------------------------------------------------------
@functools.partial(jax.jit, static_argnames=("n_heads",))
def transformer_layer(x, params, *, n_heads):
    """Pre-LN GPT-2 transformer block, reproduced verbatim from the reference:
    the reference forward calls `self.attn` in BOTH sub-blocks (it constructs
    `self.ff` but never uses it), so both sub-blocks here apply the fused
    LayerNorm + causal-MHSA + residual kernel.
    TODO(synk): nn.Dropout is modeled as inference-mode identity (no RNG)."""
    x = ln_mhsa_residual(x, params["ln1_scale"], params["wq"], params["wk"],
                         params["wv"], params["wo"], params["bo"], n_heads=n_heads)
    x = ln_mhsa_residual(x, params["ln2_scale"], params["wq"], params["wk"],
                         params["wv"], params["wo"], params["bo"], n_heads=n_heads)
    return x


# ---------------------------------------------------------------------------
# Pure-JAX references (mirror the reference module's math exactly).
# ---------------------------------------------------------------------------
def _layernorm_reference(x, scale):
    mean = x.mean(-1, keepdims=True)
    var = ((x - mean) ** 2).mean(-1, keepdims=True)        # unbiased=False
    x_norm = (x - mean) / jnp.sqrt(var + _LN_EPS)
    return scale * x_norm + scale                          # reference adds `scale`


def _gelu_reference(h):
    return 0.5 * h * (1.0 + jnp.tanh(_GELU_C * (h + _GELU_A * h ** 3)))


def _ffn_reference(x, w1, b1, w2, b2):
    return _gelu_reference(x @ w1 + b1) @ w2 + b2


def _mhsa_reference(x, wq, wk, wv, wo, bo, n_heads):
    B, T, D = x.shape
    Dh = D // n_heads

    def split(y):
        return y.reshape(B, T, n_heads, Dh).transpose(0, 2, 1, 3)

    q, k, v = split(x @ wq), split(x @ wk), split(x @ wv)
    s = jnp.einsum("bhqd,bhkd->bhqk", q, k)
    mask = jnp.triu(jnp.ones((T, T), bool), k=1)
    s = jnp.where(mask, -jnp.inf, s)
    p = jax.nn.softmax(s / (Dh ** 0.5), axis=-1)
    ctx = jnp.einsum("bhqk,bhkd->bhqd", p, v).transpose(0, 2, 1, 3).reshape(B, T, D)
    return ctx @ wo + bo


def _layer_reference(x, p, n_heads):
    h = _layernorm_reference(x, p["ln1_scale"])
    x = x + _mhsa_reference(h, p["wq"], p["wk"], p["wv"], p["wo"], p["bo"], n_heads)
    h = _layernorm_reference(x, p["ln2_scale"])
    x = x + _mhsa_reference(h, p["wq"], p["wk"], p["wv"], p["wo"], p["bo"], n_heads)
    return x


if __name__ == "__main__":
    # Small config: emb_dim=32, context_len=8, n_heads=2, batch=2, d_hidden=4*emb.
    B, T, D = 2, 8, 32
    n_heads = 2
    d_hidden = 4 * D

    key = jax.random.PRNGKey(0)
    ks = jax.random.split(key, 10)

    def uniform(k, shape, fan_in):
        lim = 1.0 / math.sqrt(fan_in)
        return jax.random.uniform(k, shape, jnp.float32, -lim, lim)

    x = jax.random.normal(ks[0], (B, T, D), jnp.float32)
    params = dict(
        ln1_scale=jnp.ones((D,), jnp.float32),
        ln2_scale=jnp.ones((D,), jnp.float32),
        wq=uniform(ks[1], (D, D), D),
        wk=uniform(ks[2], (D, D), D),
        wv=uniform(ks[3], (D, D), D),
        wo=uniform(ks[4], (D, D), D),
        bo=uniform(ks[5], (D,), D),
        w1=uniform(ks[6], (D, d_hidden), D),
        b1=uniform(ks[7], (d_hidden,), D),
        w2=uniform(ks[8], (d_hidden, D), d_hidden),
        b2=uniform(ks[9], (D,), d_hidden),
    )

    # 1) LayerNorm kernel.
    ln = layer_norm(x, params["ln1_scale"])
    jax.block_until_ready(ln)
    ln_ref = _layernorm_reference(x, params["ln1_scale"])
    assert jnp.allclose(ln, ln_ref, atol=1e-4, rtol=1e-4), "LayerNorm mismatch"

    # 2) FeedForward kernel, f32 compute path: strict check against reference.
    ffn_f32 = feed_forward(x, params["w1"], params["b1"], params["w2"],
                           params["b2"], compute_dtype=jnp.float32)
    jax.block_until_ready(ffn_f32)
    ffn_ref = _ffn_reference(x, params["w1"], params["b1"], params["w2"], params["b2"])
    assert ffn_f32.shape == (B, T, D)
    assert jnp.allclose(ffn_f32, ffn_ref, atol=2e-5, rtol=2e-5), "FFN f32 mismatch"

    # 3) FeedForward kernel, default bf16 MXU path (f32 accumulation): relaxed tol.
    ffn_bf16 = feed_forward(x, params["w1"], params["b1"], params["w2"], params["b2"])
    jax.block_until_ready(ffn_bf16)
    assert jnp.allclose(ffn_bf16, ffn_ref, atol=5e-2, rtol=5e-2), "FFN bf16 mismatch"

    # 4) Fused LayerNorm + causal MHSA + residual sub-block.
    sub = ln_mhsa_residual(x, params["ln1_scale"], params["wq"], params["wk"],
                           params["wv"], params["wo"], params["bo"], n_heads=n_heads)
    jax.block_until_ready(sub)
    sub_ref = x + _mhsa_reference(_layernorm_reference(x, params["ln1_scale"]),
                                  params["wq"], params["wk"], params["wv"],
                                  params["wo"], params["bo"], n_heads)
    assert jnp.allclose(sub, sub_ref, atol=1e-3, rtol=1e-3), "fused LN+MHSA mismatch"

    # 5) Full transformer layer (attn in both sub-blocks, as in the reference).
    out = transformer_layer(x, params, n_heads=n_heads)
    jax.block_until_ready(out)
    out_ref = _layer_reference(x, params, n_heads)
    assert out.shape == (B, T, D)
    assert jnp.allclose(out, out_ref, atol=2e-3, rtol=2e-3), "layer mismatch"

    print("KERNEL_OK")
</pallas_src>

<mosaic_0001>
module attributes {stable_mosaic.version = 11 : i64} {
  func.func @_layernorm_kernel(%arg0: i32, %arg1: memref<16x32xf32, #tpu.memory_space<vmem>>, %arg2: memref<1x32xf32, #tpu.memory_space<vmem>>, %arg3: memref<16x32xf32, #tpu.memory_space<vmem>>) attributes {dimension_semantics = [#tpu.dimension_semantics<parallel>], iteration_bounds = array<i64: 1>, scalar_prefetch = 0 : i64, scratch_operands = 0 : i64, tpu.core_type = #tpu.core_type<tc>, window_params = [{transform_indices = @transform_0, window_bounds = array<i64: 16, 32>}, {pipeline_mode = #tpu.pipeline_mode<synchronous>, transform_indices = @transform_1, window_bounds = array<i64: 1, 32>}, {transform_indices = @transform_2, window_bounds = array<i64: 16, 32>}]} {
    %c0 = arith.constant 0 : index
    %c0_0 = arith.constant 0 : index
    %0 = vector.load %arg1[%c0, %c0_0] : memref<16x32xf32, #tpu.memory_space<vmem>>, vector<16x32xf32>
    %c0_1 = arith.constant 0 : index
    %c0_2 = arith.constant 0 : index
    %1 = vector.load %arg2[%c0_1, %c0_2] : memref<1x32xf32, #tpu.memory_space<vmem>>, vector<1x32xf32>
    %cst = arith.constant dense<0.000000e+00> : vector<16xf32>
    %2 = vector.multi_reduction <add>, %0, %cst [1] : vector<16x32xf32> to vector<16xf32>
    %3 = vector.shape_cast %2 : vector<16xf32> to vector<16x1xf32>
    %cst_3 = arith.constant 3.200000e+01 : f32
    %4 = vector.broadcast %cst_3 : f32 to vector<16x1xf32>
    %5 = arith.divf %3, %4 : vector<16x1xf32>
    %6 = vector.broadcast %5 : vector<16x1xf32> to vector<16x32xf32>
    %7 = arith.subf %0, %6 : vector<16x32xf32>
    %8 = arith.mulf %7, %7 : vector<16x32xf32>
    %cst_4 = arith.constant dense<0.000000e+00> : vector<16xf32>
    %9 = vector.multi_reduction <add>, %8, %cst_4 [1] : vector<16x32xf32> to vector<16xf32>
    %10 = vector.shape_cast %9 : vector<16xf32> to vector<16x1xf32>
    %cst_5 = arith.constant 3.200000e+01 : f32
    %11 = vector.broadcast %cst_5 : f32 to vector<16x1xf32>
    %12 = arith.divf %10, %11 : vector<16x1xf32>
    %13 = vector.broadcast %5 : vector<16x1xf32> to vector<16x32xf32>
    %14 = arith.subf %0, %13 : vector<16x32xf32>
    %cst_6 = arith.constant 9.99999974E-6 : f32
    %15 = vector.broadcast %cst_6 : f32 to vector<16x1xf32>
    %16 = arith.addf %12, %15 : vector<16x1xf32>
    %17 = math.rsqrt %16 : vector<16x1xf32>
    %18 = vector.broadcast %17 : vector<16x1xf32> to vector<16x32xf32>
    %19 = arith.mulf %14, %18 : vector<16x32xf32>
    %20 = vector.broadcast %1 : vector<1x32xf32> to vector<16x32xf32>
    %21 = arith.mulf %20, %19 : vector<16x32xf32>
    %22 = vector.broadcast %1 : vector<1x32xf32> to vector<16x32xf32>
    %23 = arith.addf %21, %22 : vector<16x32xf32>
    %c0_7 = arith.constant 0 : index
    %c0_8 = arith.constant 0 : index
    %24 = vector.load %arg3[%c0_7, %c0_8] : memref<16x32xf32, #tpu.memory_space<vmem>>, vector<16x32xf32>
    tpu.vector_store %arg3[%c0_7, %c0_8], %23 {strides = array<i32>} : memref<16x32xf32, #tpu.memory_space<vmem>>, vector<16x32xf32>,
    return
  }
  func.func @transform_0(%arg0: i32) -> (i32, i32) {
    %c0_i32 = arith.constant 0 : i32
    %c0_i32_0 = arith.constant 0 : i32
    return %arg0, %c0_i32 : i32, i32
  }
  func.func @transform_1(%arg0: i32) -> (i32, i32) {
    %c0_i32 = arith.constant 0 : i32
    %c0_i32_0 = arith.constant 0 : i32
    %c0_i32_1 = arith.constant 0 : i32
    return %c0_i32, %c0_i32_0 : i32, i32
  }
  func.func @transform_2(%arg0: i32) -> (i32, i32) {
    %c0_i32 = arith.constant 0 : i32
    %c0_i32_0 = arith.constant 0 : i32
    return %arg0, %c0_i32 : i32, i32
  }
}

</mosaic_0001>

<bundles_post_ra>
// kernel: layer_norm.1
= control target key start
LH: loop header
LB: loop body
LE: loop exit
PB: predicated region body
PF: predicated region fallthrough
CT: control target
= control target key end

     0   :  { %7 = vsyncpa [#allocation3], 0  ;;  %s179_s0 = inlined_call_operand.hbm [shape: f32[16,32], index: 0, kind: input, shape index: {}]   ;;  %s180_s1 = inlined_call_operand.vmem [shape: f32[1,32], index: 1, kind: input, shape index: {}]   ;;  %s181_s2 = inlined_call_operand.hbm [shape: f32[16,32], index: 2, kind: output, shape index: {}]  }
   0x1   :  { %8 = vsyncpa [#allocation4], 0  ;;  %s139_s9 = smov [#allocation2]  }
   0x2   :  { %s14_s10 = sshll.u32 %s139_s9, 4  ;;  %s15_s10 = int_to_ptr.vmem [resolvable:$true] %s14_s10 }
   0x3   :  { %s103_s11 = scalar_lea.vmem %s15_s10, 256  ;;  %p108_p1 = scmp.lt.s32.totalorder %s15_s10, %s15_s10 }
   0x4   :  { %p104_p0 = scmp.ne.s32.totalorder %s15_s10, %s103_s11  ;;  %p109_p2 = scmp.lt.s32.totalorder %s103_s11, %s103_s11 }
   0x6   :  { %p110_p3 = por %p109_p2, %p108_p1 }
   0x8   :  { %p111_p4 = pnand %p110_p3, %p104_p0 }
   0xa   :  { %114 = shalt.err (!%p111_p4)
}
   0xb   :  { %s140_s12 = smov 128   ;;  %s141_s13 = smov 8  }
   0xc   :  { %20 = dma.hbm_to_vmem [thread:$0]  %s179_s0, 256, %s15_s10, [#allocation3], %s140_s12, %s140_s12, %s141_s13  }
   0xd   :  { %135 = dma.done.wait [#allocation3], 256  }
   0xe   :  { %136 = vsyncadd [#allocation3], 4294967040  ;;  %vm29_vm0 = vcmask 261120   ;;  %v26_v0 = vld [vmem:[#allocation2] sm:$0xff]  ;;  %v27_v1 = vld [vmem:[#allocation2 + $0x8] sm:$0xff]  ;;  %s142_s17 = smov [#allocation5]  }
   0xf   :  { %v30_v2 = vsel %vm29_vm0, %v26_v0, 0.0  ;;  %v33_v3 = vsel %vm29_vm0, %v27_v1, 0.0  ;;  %v86_v21 = vld [vmem:[%s180_s1] ss:$0 sm:$0xff]  ;;  %s74_s18 = sshll.u32 %s142_s17, 4  ;;  %s75_s18 = int_to_ptr.vmem [resolvable:$true] %s74_s18 }
  0x10   :  { %31 = vadd.xlane.f32.xlu0 %v30_v2  ;;  %s115_s19 = scalar_lea.vmem %s75_s18, 256  ;;  %p120_p6 = scmp.lt.s32.totalorder %s75_s18, %s75_s18 }
  0x11   :  { %p116_p5 = scmp.ne.s32.totalorder %s75_s18, %s115_s19  ;;  %p121_p7 = scmp.lt.s32.totalorder %s115_s19, %s115_s19 }
  0x13   :  { %p122_p8 = por %p121_p7, %p120_p6 }
  0x14   :  { %34 = vadd.xlane.f32.xlu0 %v33_v3 }
  0x15   :  { %p123_p9 = pnand %p122_p8, %p116_p5 }
  0x99   :  { %v32_v4 = vpop.xlane.xlu0 %31 }
  0x9a   :  { %v37_v5 = vmul.f32 0.03125, %v32_v4 }
  0x9c   :  { %v39_v6 = vsub.f32 %v26_v0, %v37_v5 }
  0x9d   :  { %v35_v7 = vpop.xlane.xlu0 %34 }
  0x9e   :  { %v38_v8 = vmul.f32 0.03125, %v35_v7  ;;  %v41_v9 = vmul.f32 %v39_v6, %v39_v6 }
  0xa0   :  { %v40_v10 = vsub.f32 %v27_v1, %v38_v8  ;;  %v43_v11 = vsel %vm29_vm0, %v41_v9, 0.0 }
  0xa1   :  { %44 = vadd.xlane.f32.xlu1 %v43_v11 }
  0xa2   :  { %v42_v12 = vmul.f32 %v40_v10, %v40_v10 }
  0xa4   :  { %v46_v13 = vsel %vm29_vm0, %v42_v12, 0.0 }
  0xa5   :  { %47 = vadd.xlane.f32.xlu1 %v46_v13 }
 0x12a   :  { %v45_v14 = vpop.xlane.xlu1 %44 }
 0x12b   :  { %v49_v15 = vmul.f32 0.03125, %v45_v14 }
 0x12d   :  { %v51_v16 = vadd.f32 1e-05, %v49_v15 }
 0x12e   :  { %v48_v17 = vpop.xlane.xlu1 %47 }
 0x12f   :  { %91 = vrsqrt.f32 %v51_v16  ;;  %v50_v18 = vmul.f32 0.03125, %v48_v17 }
 0x131   :  { %v52_v19 = vadd.f32 1e-05, %v50_v18 }
 0x133   :  { %93 = vrsqrt.f32 %v52_v19 }
 0x13c   :  { %v92_v20 = vpop.eup %91 }
 0x13d   :  { %v55_v22 = vmul.f32 %v92_v20, %v39_v6 }
 0x13f   :  { %v63_v23 = vmul.f32 %v86_v21, %v55_v22 }
 0x140   :  { %v94_v24 = vpop.eup %93 }
 0x141   :  { %v56_v25 = vmul.f32 %v94_v24, %v40_v10  ;;  %v65_v26 = vadd.f32 %v86_v21, %v63_v23 }
 0x143   :  { %v64_v27 = vmul.f32 %v86_v21, %v56_v25  ;;  %67 = vst.msk [vmem:[#allocation5] sm:$0xff] %vm29_vm0, %v65_v26 }
 0x145   :  { %v66_v28 = vadd.f32 %v86_v21, %v64_v27 }
 0x147   :  { %68 = vst.msk [vmem:[#allocation5 + $0x8] sm:$0xff] %vm29_vm0, %v66_v28 }
 0x148   :  { %126 = shalt.err (!%p123_p9)
}
 0x149   :  { %80 = dma.vmem_to_hbm [thread:$0]  %s75_s18, 256, %s181_s2, [#allocation4], %s140_s12, %s140_s12, %s141_s13  }
 0x14a   :  { %137 = dma.done.wait [#allocation4], 256  }
 0x14b   :  { %138 = vsyncadd [#allocation4], 4294967040 }
 0x14c   :  { %84 = vsyncpa [#allocation3], 1 }
 0x14d   :  { %85 = vsyncpa [#allocation4], 1 }

</bundles_post_ra>
